<compile_context>
chip_gen: v7x
topology: tpu7x:2x2x1
jax: 0.10.0
libtpu: 0.0.40
codegen_flags: <defaults>
</compile_context>

<pallas_src>
import math
import numpy as np

import jax
import jax.numpy as jnp
from jax import lax
from jax.experimental import pallas as pl
from jax.experimental.pallas import tpu as pltpu

PACK = 2  # images packed along the lane axis (2 * W * C = 128 lanes at demo shape)


# ----------------------------------------------------------------------------
# DCT filter bank (numpy port of dct_filters from the reference module).
# ----------------------------------------------------------------------------
def dct_filters_np(k=3, groups=1, expand_dim=1, level=None, DC=True, l1_norm=True):
    if level is None:
        nf = k ** 2 - int(not DC)
    elif level <= k:
        nf = level * (level + 1) // 2 - int(not DC)
    else:
        r = 2 * k - 1 - level
        nf = k ** 2 - r * (r + 1) // 2 - int(not DC)
    filter_bank = np.zeros((nf, k, k), dtype=np.float32)
    m = 0
    for i in range(k):
        for j in range(k):
            if (not DC and i == 0 and j == 0) or (level is not None and i + j >= level):
                continue
            for x in range(k):
                for y in range(k):
                    filter_bank[m, x, y] = (
                        math.cos(math.pi * (x + 0.5) * i / k)
                        * math.cos(math.pi * (y + 0.5) * j / k)
                    )
            if l1_norm:
                filter_bank[m, :, :] /= np.sum(np.abs(filter_bank[m, :, :]))
            else:
                ai = 1.0 if i > 0 else 1.0 / math.sqrt(2.0)
                aj = 1.0 if j > 0 else 1.0 / math.sqrt(2.0)
                filter_bank[m, :, :] *= 2.0 / k * ai * aj
            m += 1
    filter_bank = np.tile(np.expand_dims(filter_bank, axis=expand_dim), (groups, 1, 1, 1))
    return filter_bank.astype(np.float32)


# ----------------------------------------------------------------------------
# Fused BasicBlock kernel (PACK images per grid step, one dot per conv).
# ----------------------------------------------------------------------------
def _basic_block_kernel(x_ref, m1_ref, b1_ref, m2_ref, b2_ref, o_ref):
    # x_ref:  (H, L)      bf16 lane-packed activations (PACK images side by side)
    # m*_ref: (3*L, L)    bf16 fused banded conv matrices (BN scale folded in)
    # b*_ref: (1, L)      f32 folded BN shift (tiled across W and packed images)
    # o_ref:  (H, L)      f32
    H, L = x_ref.shape
    xb = x_ref[...]                                  # bf16 (H, L)
    zrow = jnp.zeros((1, L), dtype=xb.dtype)

    def conv_bn(inp_bf16, m_ref, b_ref):
        # Zero-pad along H (W padding + kx shifts are baked into m_ref), then
        # materialize the 3 row-shifted windows contiguously along lanes so the
        # whole 3x3 conv is ONE MXU dot with K = 3*L.
        xp = jnp.concatenate([zrow, inp_bf16, zrow], axis=0)            # (H+2, L)
        win = jnp.concatenate([xp[0:H], xp[1:H + 1], xp[2:H + 2]], axis=1)  # (H, 3L)
        acc = jnp.dot(win, m_ref[...], preferred_element_type=jnp.float32)  # f32
        return acc + b_ref[...]                                          # folded-BN shift (f32)

    # conv1 + bn1 (scale folded into m1) + relu    (f32 epilogue)
    y1 = jnp.maximum(conv_bn(xb, m1_ref, b1_ref), 0.0)                   # (H, L) f32

    # conv2 + bn2 + residual + relu  (residual add in f32)
    y2 = conv_bn(y1.astype(xb.dtype), m2_ref, b2_ref) + xb.astype(jnp.float32)
    o_ref[...] = jnp.maximum(y2, 0.0).astype(o_ref.dtype)


def basic_block_forward(x_nchw, params):
    # Demo instance only: stride=1, downsample=None, eval-mode BN.
    x = jnp.transpose(x_nchw, (0, 2, 3, 1)).astype(jnp.float32)          # NHWC
    N, H, W, C = x.shape
    assert N % PACK == 0, "lane packing requires batch % PACK == 0"
    P = N // PACK
    L = PACK * W * C

    # Lane-pack PACK images side by side -> (P, H, L); bf16 MXU/HBM operands.
    x2d = (x.reshape(P, PACK, H, W, C)
             .transpose(0, 2, 1, 3, 4)
             .reshape(P, H, L)
             .astype(jnp.bfloat16))

    grid_spec = pltpu.PrefetchScalarGridSpec(
        num_scalar_prefetch=0,
        grid=(P,),                                           # P == 1 at demo shape
        in_specs=[
            pl.BlockSpec((None, H, L), lambda p: (p, 0, 0)),   # x (lane-dense, bf16)
            pl.BlockSpec((3 * L, L), lambda p: (0, 0)),        # m1 fused (bf16, grid-invariant)
            pl.BlockSpec((1, L), lambda p: (0, 0)),            # shift1 (f32)
            pl.BlockSpec((3 * L, L), lambda p: (0, 0)),        # m2 fused
            pl.BlockSpec((1, L), lambda p: (0, 0)),            # shift2
        ],
        out_specs=pl.BlockSpec((None, H, L), lambda p: (p, 0, 0)),
    )

    out2d = pl.pallas_call(
        _basic_block_kernel,
        out_shape=jax.ShapeDtypeStruct((P, H, L), jnp.float32),
        grid_spec=grid_spec,
        # Grid has a single step at the demo size; cross-core sharding of
        # microsecond-scale work would only add overhead.
        compiler_params=pltpu.CompilerParams(dimension_semantics=("arbitrary",)),
    )(x2d, params["m1"], params["b1"], params["m2"], params["b2"])

    out = (out2d.reshape(P, H, PACK, W, C)
                .transpose(0, 2, 1, 3, 4)
                .reshape(N, H, W, C))
    return jnp.transpose(out, (0, 3, 1, 2))                   # NHWC -> NCHW


# ----------------------------------------------------------------------------
# Parameter construction (deterministic, shapes per the module __init__).
# ----------------------------------------------------------------------------
def _fused_banded_conv_matrix(filt_hwio, scale, W, pack):
    """(3,3,Cin,Cout) HWIO filter with folded BN scale -> (3*pack*W*Cin, pack*W*Cout).

    M_ky[w_in*Cin + ci, w_out*Cout + co] = filt[ky, w_in - w_out + 1, ci, co]
    (zero outside the 3-wide band): encodes kx shifts, channel mixing and the
    zero padding along W.  The band is replicated block-diagonally across the
    `pack` lane-packed images (they never mix), and the 3 ky matrices are
    stacked along K so one dot does the whole 3x3 conv.
    """
    filt = np.asarray(filt_hwio) * np.asarray(scale)[None, None, None, :]
    kh, kw, Cin, Cout = filt.shape
    Mi, Mo = W * Cin, W * Cout
    M = np.zeros((kh, Mi, Mo), np.float32)
    for ky in range(kh):
        for w_out in range(W):
            for kx in range(kw):
                w_in = w_out + kx - 1          # padding = 1 along W
                if 0 <= w_in < W:
                    M[ky,
                      w_in * Cin:(w_in + 1) * Cin,
                      w_out * Cout:(w_out + 1) * Cout] = filt[ky, kx]
    Li, Lo = pack * Mi, pack * Mo
    Mp = np.zeros((kh, Li, Lo), np.float32)
    for p in range(pack):
        Mp[:, p * Mi:(p + 1) * Mi, p * Mo:(p + 1) * Mo] = M
    return jnp.asarray(Mp.reshape(kh * Li, Lo), dtype=jnp.bfloat16)


def make_basic_block_params(key, inplanes, planes, W):
    assert inplanes == planes, "demo instance: stride=1, downsample=None"
    dct = jnp.asarray(dct_filters_np(k=3, groups=1, expand_dim=0,
                                     level=None, DC=True, l1_norm=True))  # (1,9,3,3)
    nf = dct.shape[1]  # 9
    keys = jax.random.split(key, 6)

    def harm_weight(k, ni, no):
        # Harm2d weight: (no, ni, nf, 1, 1); kaiming_normal_ fan_out.
        fan_out = no * nf
        std = math.sqrt(2.0 / fan_out)
        return jax.random.normal(k, (no, ni, nf, 1, 1), jnp.float32) * std

    def fold_harm(weight):
        # filt = sum(weight * dct, dim=2) -> OIHW (no, ni, 3, 3) -> HWIO.
        filt_oihw = jnp.sum(weight * dct, axis=2)
        return jnp.transpose(filt_oihw, (2, 3, 1, 0))      # (3, 3, ni, no)

    filt1 = fold_harm(harm_weight(keys[0], inplanes, planes))
    filt2 = fold_harm(harm_weight(keys[1], planes, planes))

    # BatchNorm2d(planes): eval-mode fold (running stats at defaults).
    eps = 1e-5

    def bn_fold(kg, kb):
        gamma = 1.0 + 0.1 * jax.random.normal(kg, (planes,), jnp.float32)
        beta = 0.1 * jax.random.normal(kb, (planes,), jnp.float32)
        running_mean = jnp.zeros((planes,), jnp.float32)
        running_var = jnp.ones((planes,), jnp.float32)
        scale = gamma / jnp.sqrt(running_var + eps)
        shift = beta - running_mean * scale
        return scale, shift

    scale1, shift1 = bn_fold(keys[2], keys[3])
    scale2, shift2 = bn_fold(keys[4], keys[5])

    L = PACK * W * planes
    return dict(
        # fused-kernel parameters (BN scale folded into the conv matrices)
        m1=_fused_banded_conv_matrix(filt1, scale1, W, PACK),
        m2=_fused_banded_conv_matrix(filt2, scale2, W, PACK),
        b1=jnp.tile(shift1, PACK * W).reshape(1, L).astype(jnp.float32),
        b2=jnp.tile(shift2, PACK * W).reshape(1, L).astype(jnp.float32),
        # module-form parameters (for the pure-JAX reference)
        filt1=filt1, scale1=scale1, shift1=shift1,
        filt2=filt2, scale2=scale2, shift2=shift2,
    )


# ----------------------------------------------------------------------------
# Pure-JAX reference (lax.conv, f32) for correctness checking.
# ----------------------------------------------------------------------------
def _ref_conv(x_nhwc, filt_hwio):
    return lax.conv_general_dilated(
        x_nhwc, filt_hwio, window_strides=(1, 1), padding=((1, 1), (1, 1)),
        dimension_numbers=("NHWC", "HWIO", "NHWC"))


def basic_block_reference(x_nchw, params):
    x = jnp.transpose(x_nchw, (0, 2, 3, 1)).astype(jnp.float32)
    identity = x
    out = _ref_conv(x, params["filt1"]) * params["scale1"] + params["shift1"]
    out = jnp.maximum(out, 0.0)
    out = _ref_conv(out, params["filt2"]) * params["scale2"] + params["shift2"]
    out = jnp.maximum(out + identity, 0.0)
    return jnp.transpose(out, (0, 3, 1, 2))


if __name__ == "__main__":
    key = jax.random.PRNGKey(0)
    k_x, k_p = jax.random.split(key)

    # inplanes = planes = 4, stride = 1, downsample = None
    N, C, H, W = 2, 4, 16, 16
    x = jax.random.normal(k_x, (N, C, H, W), jnp.float32)
    params = make_basic_block_params(k_p, inplanes=C, planes=C, W=W)

    out = jax.block_until_ready(basic_block_forward(x, params))
    ref = jax.block_until_ready(basic_block_reference(x, params))

    assert out.shape == (N, C, H, W), out.shape
    # bf16 MXU operands vs f32 reference -> looser tolerance (f32 accumulation).
    np.testing.assert_allclose(np.asarray(out), np.asarray(ref),
                               rtol=3e-2, atol=3e-2)

    print("KERNEL_OK")
</pallas_src>

<mosaic_0001>
module attributes {stable_mosaic.version = 11 : i64} {
  func.func @_basic_block_kernel(%arg0: i32, %arg1: memref<1x16x128xbf16, #tpu.memory_space<vmem>>, %arg2: memref<384x128xbf16, #tpu.memory_space<vmem>>, %arg3: memref<1x128xf32, #tpu.memory_space<vmem>>, %arg4: memref<384x128xbf16, #tpu.memory_space<vmem>>, %arg5: memref<1x128xf32, #tpu.memory_space<vmem>>, %arg6: memref<1x16x128xf32, #tpu.memory_space<vmem>>) attributes {dimension_semantics = [#tpu.dimension_semantics<arbitrary>], iteration_bounds = array<i64: 1>, scalar_prefetch = 0 : i64, scratch_operands = 0 : i64, tpu.core_type = #tpu.core_type<tc>, window_params = [{transform_indices = @transform_0, window_bounds = array<i64: 1, 16, 128>}, {pipeline_mode = #tpu.pipeline_mode<synchronous>, transform_indices = @transform_1, window_bounds = array<i64: 384, 128>}, {pipeline_mode = #tpu.pipeline_mode<synchronous>, transform_indices = @transform_2, window_bounds = array<i64: 1, 128>}, {pipeline_mode = #tpu.pipeline_mode<synchronous>, transform_indices = @transform_3, window_bounds = array<i64: 384, 128>}, {pipeline_mode = #tpu.pipeline_mode<synchronous>, transform_indices = @transform_4, window_bounds = array<i64: 1, 128>}, {transform_indices = @transform_5, window_bounds = array<i64: 1, 16, 128>}]} {
    %c0 = arith.constant 0 : index
    %c0_0 = arith.constant 0 : index
    %c0_1 = arith.constant 0 : index
    %0 = vector.load %arg1[%c0, %c0_0, %c0_1] : memref<1x16x128xbf16, #tpu.memory_space<vmem>>, vector<1x16x128xbf16>
    %1 = vector.shape_cast %0 : vector<1x16x128xbf16> to vector<16x128xbf16>
    %cst = arith.constant 0.000000e+00 : bf16
    %2 = vector.broadcast %cst : bf16 to vector<1x128xbf16>
    %3 = tpu.concatenate %2, %1, %2 in 0 : vector<1x128xbf16>, vector<16x128xbf16>, vector<1x128xbf16> -> vector<18x128xbf16>
    %4 = vector.extract_strided_slice %3 {offsets = [0, 0], sizes = [16, 128], strides = [1, 1]} : vector<18x128xbf16> to vector<16x128xbf16>
    %5 = vector.extract_strided_slice %3 {offsets = [1, 0], sizes = [16, 128], strides = [1, 1]} : vector<18x128xbf16> to vector<16x128xbf16>
    %6 = vector.extract_strided_slice %3 {offsets = [2, 0], sizes = [16, 128], strides = [1, 1]} : vector<18x128xbf16> to vector<16x128xbf16>
    %7 = tpu.concatenate %4, %5, %6 in 1 : vector<16x128xbf16>, vector<16x128xbf16>, vector<16x128xbf16> -> vector<16x384xbf16>
    %c0_2 = arith.constant 0 : index
    %c0_3 = arith.constant 0 : index
    %8 = vector.load %arg2[%c0_2, %c0_3] : memref<384x128xbf16, #tpu.memory_space<vmem>>, vector<384x128xbf16>
    %cst_4 = arith.constant dense<0.000000e+00> : vector<16x128xf32>
    %9 = tpu.matmul %7, %8, %cst_4 {dimension_numbers = #tpu.dot_dimension_numbers<[1], [0], [0], [1], [0, 0, 1, 1], [], []>} : vector<16x384xbf16>, vector<384x128xbf16>, vector<16x128xf32> -> vector<16x128xf32>
    %c0_5 = arith.constant 0 : index
    %c0_6 = arith.constant 0 : index
    %10 = vector.load %arg3[%c0_5, %c0_6] : memref<1x128xf32, #tpu.memory_space<vmem>>, vector<1x128xf32>
    %11 = vector.broadcast %10 : vector<1x128xf32> to vector<16x128xf32>
    %12 = arith.addf %9, %11 : vector<16x128xf32>
    %cst_7 = arith.constant 0.000000e+00 : f32
    %13 = vector.broadcast %cst_7 : f32 to vector<16x128xf32>
    %14 = arith.maximumf %12, %13 : vector<16x128xf32>
    %15 = arith.truncf %14 : vector<16x128xf32> to vector<16x128xbf16>
    %16 = tpu.concatenate %2, %15, %2 in 0 : vector<1x128xbf16>, vector<16x128xbf16>, vector<1x128xbf16> -> vector<18x128xbf16>
    %17 = vector.extract_strided_slice %16 {offsets = [0, 0], sizes = [16, 128], strides = [1, 1]} : vector<18x128xbf16> to vector<16x128xbf16>
    %18 = vector.extract_strided_slice %16 {offsets = [1, 0], sizes = [16, 128], strides = [1, 1]} : vector<18x128xbf16> to vector<16x128xbf16>
    %19 = vector.extract_strided_slice %16 {offsets = [2, 0], sizes = [16, 128], strides = [1, 1]} : vector<18x128xbf16> to vector<16x128xbf16>
    %20 = tpu.concatenate %17, %18, %19 in 1 : vector<16x128xbf16>, vector<16x128xbf16>, vector<16x128xbf16> -> vector<16x384xbf16>
    %c0_8 = arith.constant 0 : index
    %c0_9 = arith.constant 0 : index
    %21 = vector.load %arg4[%c0_8, %c0_9] : memref<384x128xbf16, #tpu.memory_space<vmem>>, vector<384x128xbf16>
    %cst_10 = arith.constant dense<0.000000e+00> : vector<16x128xf32>
    %22 = tpu.matmul %20, %21, %cst_10 {dimension_numbers = #tpu.dot_dimension_numbers<[1], [0], [0], [1], [0, 0, 1, 1], [], []>} : vector<16x384xbf16>, vector<384x128xbf16>, vector<16x128xf32> -> vector<16x128xf32>
    %c0_11 = arith.constant 0 : index
    %c0_12 = arith.constant 0 : index
    %23 = vector.load %arg5[%c0_11, %c0_12] : memref<1x128xf32, #tpu.memory_space<vmem>>, vector<1x128xf32>
    %24 = vector.broadcast %23 : vector<1x128xf32> to vector<16x128xf32>
    %25 = arith.addf %22, %24 : vector<16x128xf32>
    %26 = arith.extf %1 : vector<16x128xbf16> to vector<16x128xf32>
    %27 = arith.addf %25, %26 : vector<16x128xf32>
    %cst_13 = arith.constant 0.000000e+00 : f32
    %28 = vector.broadcast %cst_13 : f32 to vector<16x128xf32>
    %29 = arith.maximumf %27, %28 : vector<16x128xf32>
    %c0_14 = arith.constant 0 : index
    %c0_15 = arith.constant 0 : index
    %c0_16 = arith.constant 0 : index
    %30 = vector.load %arg6[%c0_14, %c0_15, %c0_16] : memref<1x16x128xf32, #tpu.memory_space<vmem>>, vector<1x16x128xf32>
    %31 = vector.shape_cast %30 : vector<1x16x128xf32> to vector<16x128xf32>
    %32 = vector.shape_cast %29 : vector<16x128xf32> to vector<1x16x128xf32>
    tpu.vector_store %arg6[%c0_14, %c0_15, %c0_16], %32 {strides = array<i32>} : memref<1x16x128xf32, #tpu.memory_space<vmem>>, vector<1x16x128xf32>,
    return
  }
  func.func @transform_0(%arg0: i32) -> (i32, i32, i32) {
    %c0_i32 = arith.constant 0 : i32
    %c0_i32_0 = arith.constant 0 : i32
    %c0_i32_1 = arith.constant 0 : i32
    return %arg0, %c0_i32, %c0_i32_0 : i32, i32, i32
  }
  func.func @transform_1(%arg0: i32) -> (i32, i32) {
    %c0_i32 = arith.constant 0 : i32
    %c0_i32_0 = arith.constant 0 : i32
    %c0_i32_1 = arith.constant 0 : i32
    return %c0_i32, %c0_i32_0 : i32, i32
  }
  func.func @transform_2(%arg0: i32) -> (i32, i32) {
    %c0_i32 = arith.constant 0 : i32
    %c0_i32_0 = arith.constant 0 : i32
    %c0_i32_1 = arith.constant 0 : i32
    return %c0_i32, %c0_i32_0 : i32, i32
  }
  func.func @transform_3(%arg0: i32) -> (i32, i32) {
    %c0_i32 = arith.constant 0 : i32
    %c0_i32_0 = arith.constant 0 : i32
    %c0_i32_1 = arith.constant 0 : i32
    return %c0_i32, %c0_i32_0 : i32, i32
  }
  func.func @transform_4(%arg0: i32) -> (i32, i32) {
    %c0_i32 = arith.constant 0 : i32
    %c0_i32_0 = arith.constant 0 : i32
    %c0_i32_1 = arith.constant 0 : i32
    return %c0_i32, %c0_i32_0 : i32, i32
  }
  func.func @transform_5(%arg0: i32) -> (i32, i32, i32) {
    %c0_i32 = arith.constant 0 : i32
    %c0_i32_0 = arith.constant 0 : i32
    %c0_i32_1 = arith.constant 0 : i32
    return %arg0, %c0_i32, %c0_i32_0 : i32, i32, i32
  }
}

</mosaic_0001>

<bundles_post_ra>
// kernel: tpu_custom_call.1
= control target key start
LH: loop header
LB: loop body
LE: loop exit
PB: predicated region body
PF: predicated region fallthrough
CT: control target
= control target key end

     0   :  { %10 = vsyncpa [#allocation3], 0  ;;  %s1186_s0 = inlined_call_operand.hbm [shape: bf16[1,16,128], index: 0, kind: input, shape index: {}]   ;;  %s1187_s1 = inlined_call_operand.hbm [shape: bf16[384,128], index: 1, kind: input, shape index: {}]   ;;  %s1188_s2 = inlined_call_operand.vmem [shape: f32[1,128], index: 2, kind: input, shape index: {}]   ;;  %s1189_s3 = inlined_call_operand.hbm [shape: bf16[384,128], index: 3, kind: input, shape index: {}]   ;;  %s1190_s4 = inlined_call_operand.vmem [shape: f32[1,128], index: 4, kind: input, shape index: {}]   ;;  %s1191_s5 = inlined_call_operand.hbm [shape: f32[1,16,128], index: 5, kind: output, shape index: {}]  }
   0x1   :  { %11 = vsyncpa [#allocation6], 0 }
   0x2   :  { %12 = vsyncpa [#allocation4], 0  ;;  %s1033_s18 = smov [#allocation5]   ;;  %s1034_s20 = smov [#allocation2]  }
   0x3   :  { %s30_s19 = sshll.u32 %s1033_s18, 4  ;;  %s18_s21 = sshll.u32 %s1034_s20, 4  ;;  %s31_s19 = int_to_ptr.vmem [resolvable:$true] %s30_s19  ;;  %s1073_s21 = int_to_ptr.vmem [resolvable:$true] %s18_s21 }
   0x4   :  { %s939_s24 = scalar_lea.hbm %s1187_s1, 3072 }
   0x5   :  { %p940_p0 = scmp.ne.s32.totalorder %s1187_s1, %s939_s24  ;;  %p943_p1 = scmp.lt.u32.totalorder %s939_s24, %s1187_s1 }
   0x7   :  { %p945_p2 = pnand %p943_p1, %p940_p0 }
   0x9   :  { %948 = shalt.err (!%p945_p2)
}
   0xa   :  { %s949_s29 = scalar_lea.vmem %s31_s19, 3072  ;;  %p954_p4 = scmp.lt.s32.totalorder %s31_s19, %s31_s19 }
   0xb   :  { %p950_p3 = scmp.ne.s32.totalorder %s31_s19, %s949_s29  ;;  %p955_p5 = scmp.lt.s32.totalorder %s949_s29, %s949_s29 }
   0xd   :  { %p956_p6 = por %p955_p5, %p954_p4 }
   0xf   :  { %p957_p7 = pnand %p956_p6, %p950_p3 }
  0x11   :  { %960 = shalt.err (!%p957_p7)
}
  0x12   :  { %s1035_s30 = smov 64   ;;  %s1036_s6 = smov 4  }
  0x13   :  { %36 = dma.hbm_to_vmem [thread:$0]  %s1187_s1, 3072, %s31_s19, [#allocation6], %s1035_s30, %s1035_s30, %s1036_s6  }
  0x14   :  { %s961_s11 = scalar_lea.hbm %s1186_s0, 128 }
  0x15   :  { %p962_p8 = scmp.ne.s32.totalorder %s1186_s0, %s961_s11  ;;  %p965_p9 = scmp.lt.u32.totalorder %s961_s11, %s1186_s0 }
  0x17   :  { %p967_p10 = pnand %p965_p9, %p962_p8 }
  0x19   :  { %970 = shalt.err (!%p967_p10)
}
  0x1a   :  { %s971_s16 = scalar_lea.vmem %s1073_s21, 128  ;;  %p976_p12 = scmp.lt.s32.totalorder %s1073_s21, %s1073_s21 }
  0x1b   :  { %p972_p11 = scmp.ne.s32.totalorder %s1073_s21, %s971_s16  ;;  %p977_p13 = scmp.lt.s32.totalorder %s971_s16, %s971_s16 }
  0x1d   :  { %p978_p0 = por %p977_p13, %p976_p12 }
  0x1f   :  { %p979_p1 = pnand %p978_p0, %p972_p11 }
  0x21   :  { %982 = shalt.err (!%p979_p1)
}
  0x22   :  { %24 = dma.hbm_to_vmem [thread:$0]  %s1186_s0, 128, %s1073_s21, [#allocation3], %s1035_s30, %s1035_s30, %s1036_s6  }
  0x23   :  { %s1037_s18 = smov [#allocation7]   ;;  %s983_s23 = scalar_lea.hbm %s1189_s3, 3072 }
  0x24   :  { %s44_s19 = sshll.u32 %s1037_s18, 4  ;;  %p984_p2 = scmp.ne.s32.totalorder %s1189_s3, %s983_s23  ;;  %s45_s19 = int_to_ptr.vmem [resolvable:$true] %s44_s19 }
  0x25   :  { %p987_p3 = scmp.lt.u32.totalorder %s983_s23, %s1189_s3 }
  0x27   :  { %p989_p4 = pnand %p987_p3, %p984_p2 }
  0x29   :  { %992 = shalt.err (!%p989_p4)
}
  0x2a   :  { %s993_s28 = scalar_lea.vmem %s45_s19, 3072  ;;  %p998_p6 = scmp.lt.s32.totalorder %s45_s19, %s45_s19 }
  0x2b   :  { %p994_p5 = scmp.ne.s32.totalorder %s45_s19, %s993_s28  ;;  %p999_p7 = scmp.lt.s32.totalorder %s993_s28, %s993_s28 }
  0x2d   :  { %p1000_p8 = por %p999_p7, %p998_p6 }
  0x2f   :  { %p1001_p9 = pnand %p1000_p8, %p994_p5 }
  0x31   :  { %1004 = shalt.err (!%p1001_p9)
}
  0x32   :  { %50 = dma.hbm_to_vmem [thread:$0]  %s1189_s3, 3072, %s45_s19, [#allocation6], %s1035_s30, %s1035_s30, %s1036_s6  }
  0x33   :  { %1027 = dma.done.wait [#allocation3], 128  }
  0x34   :  { %1028 = vsyncadd [#allocation3], 4294967168 }
  0x35   :  { %1029 = dma.done.wait [#allocation6], 6144  }
  0x36   :  { %1030 = vsyncadd [#allocation6], 4294961152  ;;  %v1038_v0 = vmov 0.0   ;;  %vm1039_vm0 = vmmov 0   ;;  %v889_v1 = vld [vmem:[#allocation5 + $0x40] sm:$0xff]   ;;  %v892_v4 = vld [vmem:[#allocation5 + $0x48] sm:$0xff]  }
  0x37   :  { %839 = vmatprep.subr.bf16.mxu1 %v1038_v0  ;;  %855 = vmatprep.mubr.msk.bf16.mxu1 %vm1039_vm0, %v1038_v0  ;;  %v890_v2 = vld [vmem:[#allocation5] sm:$0xff]   ;;  %v893_v5 = vld [vmem:[#allocation5 + $0x8] sm:$0xff]   ;;  %v895_v7 = vld [vmem:[#allocation5 + $0x50] sm:$0xff]   ;;  %vm80_vm1 = vsmask.f32 256  ;;  %vm79_vm2 = vcmask 1040384  }
  0x38   :  { %777 = vmatprep.subr.bf16.mxu0 %v889_v1  ;;  %v891_v3 = vld [vmem:[#allocation5 + $0x80] sm:$0xff]   ;;  %v894_v6 = vld [vmem:[#allocation5 + $0x88] sm:$0xff]   ;;  %v896_v8 = vld [vmem:[#allocation5 + $0x10] sm:$0xff]   ;;  %vm84_vm4 = vsmask.f32 7424  ;;  %vm100_vm5 = vcmask 1046528  }
  0x39   :  { %778 = vmatpush3.bf16.msra.mxu0 %v890_v2  ;;  %840 = vmatpush3.bf16.msra.mxu1 %v891_v3  ;;  %v897_v9 = vld [vmem:[#allocation5 + $0x90] sm:$0xff]   ;;  %v898_v10 = vld [vmem:[#allocation5 + $0x58] sm:$0xff]   ;;  %v901_v13 = vld [vmem:[#allocation5 + $0x60] sm:$0xff]   ;;  %s1040_s6 = smov [#allocation8]  }
  0x3a   :  { %779 = vmatprep.subr.bf16.mxu0 %v892_v4  ;;  %841 = vmatprep.subr.bf16.mxu1 %v1038_v0  ;;  %v899_v11 = vld [vmem:[#allocation5 + $0x18] sm:$0xff]   ;;  %v902_v14 = vld [vmem:[#allocation5 + $0x20] sm:$0xff]   ;;  %v904_v16 = vld [vmem:[#allocation5 + $0x68] sm:$0xff]   ;;  %s713_s7 = sshll.u32 %s1040_s6, 4  ;;  %s714_s7 = int_to_ptr.vmem [resolvable:$true] %s713_s7 }
  0x3b   :  { %v900_v12 = vld [vmem:[#allocation5 + $0x98] sm:$0xff]   ;;  %v903_v15 = vld [vmem:[#allocation5 + $0xa0] sm:$0xff]   ;;  %v905_v17 = vld [vmem:[#allocation5 + $0x28] sm:$0xff]   ;;  %p1010_p11 = scmp.lt.s32.totalorder %s714_s7, %s714_s7 }
  0x3c   :  { %v906_v18 = vld [vmem:[#allocation5 + $0xa8] sm:$0xff]   ;;  %v907_v19 = vld [vmem:[#allocation5 + $0x70] sm:$0xff]   ;;  %v1133_v22 = vld [vmem:[#allocation2] sm:$0xff]  }
  0x3d   :  { %780 = vmatpush3.bf16.msra.mxu0 %v893_v5  ;;  %842 = vmatpush3.bf16.msra.mxu1 %v894_v6  ;;  %v908_v20 = vld [vmem:[#allocation5 + $0x30] sm:$0xff]   ;;  %v910_v23 = vld [vmem:[#allocation5 + $0x78] sm:$0xff]   ;;  %vm1137_vm3 = vmand %vm79_vm2, %vm80_vm1  ;;  %v71_v26 = vshrl.u32 %v1133_v22, 16  ;;  %v74_v27 = vshll.u32 %v1133_v22, 16 }
  0x3e   :  { %781 = vmatprep.subr.bf16.mxu0 %v895_v7  ;;  %843 = vmatprep.subr.bf16.mxu1 %v1038_v0  ;;  %v909_v21 = vld [vmem:[#allocation5 + $0xb0] sm:$0xff]   ;;  %v911_v25 = vld [vmem:[#allocation5 + $0x38] sm:$0xff]   ;;  %v915_v30 = vld [vmem:[#allocation7 + $0x40] sm:$0xff]  }
  0x3f   :  { %v913_v28 = vld [vmem:[#allocation5 + $0xb8] sm:$0xff]   ;;  %v73_v29 = vrot.slane %v71_v26, 7  ;;  %v914_v39 = vld [vmem:[#allocation7 + $0x80] sm:$0xff]   ;;  %v916_v43 = vld [vmem:[#allocation7 + $0x88] sm:$0xff]  }
  0x40   :  { %v917_v44 = vld [vmem:[#allocation7] sm:$0xff]   ;;  %v918_v47 = vld [vmem:[#allocation7 + $0x48] sm:$0xff]   ;;  %v919_v48 = vld [vmem:[#allocation7 + $0x90] sm:$0xff]  }
  0x41   :  { %782 = vmatpush3.bf16.msra.mxu0 %v896_v8  ;;  %844 = vmatpush3.bf16.msra.mxu1 %v897_v9  ;;  %v76_v31 = vor.u32 %v74_v27, %v73_v29  ;;  %v83_v32 = vsel %vm1137_vm3, %v73_v29, 0  ;;  %v920_v49 = vld [vmem:[#allocation7 + $0x8] sm:$0xff]   ;;  %v921_v50 = vld [vmem:[#allocation7 + $0x50] sm:$0xff]   ;;  %v922_v51 = vld [vmem:[#allocation7 + $0x98] sm:$0xff]  }
  0x42   :  { %783 = vmatprep.subr.bf16.mxu0 %v898_v10  ;;  %845 = vmatprep.subr.bf16.mxu1 %v1038_v0  ;;  %v93_v33 = vshll.u32 %v83_v32, 16  ;;  %v102_v34 = vrot.slane %v83_v32, 1  ;;  %v923_v52 = vld [vmem:[#allocation7 + $0x10] sm:$0xff]   ;;  %v924_v53 = vld [vmem:[#allocation7 + $0x58] sm:$0xff]   ;;  %v925_v54 = vld [vmem:[#allocation7 + $0xa0] sm:$0xff]  }
  0x43   :  { %v82_v35 = vsel %vm1137_vm3, 0, %v76_v31  ;;  %v926_v55 = vld [vmem:[#allocation7 + $0x18] sm:$0xff]   ;;  %v927_v56 = vld [vmem:[#allocation7 + $0x60] sm:$0xff]   ;;  %v928_v57 = vld [vmem:[#allocation7 + $0xa8] sm:$0xff]  }
  0x44   :  { %v86_v36 = vshrl.u32 %v82_v35, 16  ;;  %v88_v37 = vshll.u32 %v82_v35, 16  ;;  %v101_v38 = vrot.slane %v82_v35, 1  ;;  %v95_v41 = vrot.slane %v93_v33, 1  ;;  %v929_v58 = vld [vmem:[#allocation7 + $0x20] sm:$0xff]   ;;  %v930_v59 = vld [vmem:[#allocation7 + $0x68] sm:$0xff]  }
  0x45   :  { %784 = vmatpush3.bf16.msra.mxu0 %v899_v11  ;;  %846 = vmatpush3.bf16.msra.mxu1 %v900_v12  ;;  %v931_v60 = vld [vmem:[#allocation7 + $0xb0] sm:$0xff]   ;;  %v932_v61 = vld [vmem:[#allocation7 + $0x28] sm:$0xff]   ;;  %v934_v63 = vld [vmem:[#allocation7 + $0xb8] sm:$0xff]  }
  0x46   :  { %785 = vmatprep.subr.bf16.mxu0 %v901_v13  ;;  %847 = vmatprep.subr.bf16.mxu1 %v1038_v0  ;;  %v90_v40 = vrot.slane %v88_v37, 1  ;;  %v103_v42 = vsel %vm100_vm5, %v101_v38, %v102_v34  ;;  %v933_v62 = vld [vmem:[#allocation7 + $0x70] sm:$0xff]   ;;  %v936_v2 = vld [vmem:[#allocation7 + $0x78] sm:$0xff]  }
  0x47   :  { %v935_v1 = vld [vmem:[#allocation7 + $0x30] sm:$0xff]   ;;  %v937_v3 = vld [vmem:[#allocation7 + $0x38] sm:$0xff]  }
  0x48   :  { %v91_v45 = vor.u32 %v90_v40, %v86_v36 }
  0x49   :  { %786 = vmatpush3.bf16.msra.mxu0 %v902_v14  ;;  %848 = vmatpush3.bf16.msra.mxu1 %v903_v15 }
  0x4a   :  { %787 = vmatprep.subr.bf16.mxu0 %v904_v16  ;;  %849 = vmatprep.subr.bf16.mxu1 %v1038_v0  ;;  %v96_v46 = vsel %vm84_vm4, %v91_v45, %v95_v41 }
  0x4b   :  { %336 = vmatprep.mubr.bf16.mxu0 %v96_v46 }
  0x4d   :  { %788 = vmatpush3.bf16.msra.mxu0 %v905_v17  ;;  %850 = vmatpush3.bf16.msra.mxu1 %v906_v18 }
  0x4e   :  { %789 = vmatprep.subr.bf16.mxu0 %v907_v19  ;;  %851 = vmatprep.subr.bf16.mxu1 %v1038_v0 }
  0x51   :  { %790 = vmatpush3.bf16.msra.mxu0 %v908_v20  ;;  %852 = vmatpush3.bf16.msra.mxu1 %v909_v21 }
  0x52   :  { %791 = vmatprep.subr.bf16.mxu0 %v910_v23  ;;  %853 = vmatprep.subr.bf16.mxu1 %v1038_v0 }
  0x55   :  { %792 = vmatpush3.bf16.msra.mxu0 %v911_v25  ;;  %854 = vmatpush3.bf16.msra.mxu1 %v913_v28 }
  0x56   :  { %808 = vmatprep.subr.bf16.mxu0 %v915_v30  ;;  %859 = vmatprep.subr.bf16.mxu1 %v1038_v0 }
  0x58   :  { %856 = vmatmul.mubr.bf16.vlgmr.msra.gmra.mrb[0].mxu1 %v103_v42  ;;  %337 = vmatmul.mubr.bf16.vlgmr.msra.gmra.mrb[0].mxu0 %v82_v35 }
  0x59   :  { %860 = vmatpush3.bf16.msra.mxu1 %v914_v39  ;;  %875 = vmatprep.mubr.msk.bf16.mxu1 %vm1039_vm0, %v1038_v0 }
  0x5a   :  { %861 = vmatprep.subr.bf16.mxu1 %v1038_v0  ;;  %809 = vmatpush3.bf16.msra.mxu0 %v917_v44 }
  0x5b   :  { %810 = vmatprep.subr.bf16.mxu0 %v918_v47 }
  0x5d   :  { %862 = vmatpush3.bf16.msra.mxu1 %v916_v43  ;;  %v752_v43 = vld [vmem:[%s1190_s4] ss:$0 sm:$0xff]  ;;  %s1005_s4 = scalar_lea.vmem %s714_s7, 256 }
  0x5e   :  { %863 = vmatprep.subr.bf16.mxu1 %v1038_v0  ;;  %811 = vmatpush3.bf16.msra.mxu0 %v920_v49  ;;  %v700_v49 = vunpack.c.l.bf16 %v1133_v22  ;;  %p1006_p10 = scmp.ne.s32.totalorder %s714_s7, %s1005_s4  ;;  %p1011_p12 = scmp.lt.s32.totalorder %s1005_s4, %s1005_s4 }
  0x5f   :  { %812 = vmatprep.subr.bf16.mxu0 %v921_v50 }
  0x60   :  { %p1012_p13 = por %p1011_p12, %p1010_p11 }
  0x61   :  { %864 = vmatpush3.bf16.msra.mxu1 %v919_v48 }
  0x62   :  { %865 = vmatprep.subr.bf16.mxu1 %v1038_v0  ;;  %813 = vmatpush3.bf16.msra.mxu0 %v923_v52  ;;  %p1013_p0 = pnand %p1012_p13, %p1006_p10 }
  0x63   :  { %814 = vmatprep.subr.bf16.mxu0 %v924_v53  ;;  %v701_v53 = vunpack.c.h.bf16 %v1133_v22 }
  0x65   :  { %866 = vmatpush3.bf16.msra.mxu1 %v922_v51 }
  0x66   :  { %867 = vmatprep.subr.bf16.mxu1 %v1038_v0  ;;  %815 = vmatpush3.bf16.msra.mxu0 %v926_v55 }
  0x67   :  { %816 = vmatprep.subr.bf16.mxu0 %v927_v56 }
  0x69   :  { %868 = vmatpush3.bf16.msra.mxu1 %v925_v54 }
  0x6a   :  { %869 = vmatprep.subr.bf16.mxu1 %v1038_v0  ;;  %817 = vmatpush3.bf16.msra.mxu0 %v929_v58 }
  0x6b   :  { %818 = vmatprep.subr.bf16.mxu0 %v930_v59 }
  0x6d   :  { %870 = vmatpush3.bf16.msra.mxu1 %v928_v57 }
  0x6e   :  { %871 = vmatprep.subr.bf16.mxu1 %v1038_v0  ;;  %819 = vmatpush3.bf16.msra.mxu0 %v932_v61 }
  0x6f   :  { %820 = vmatprep.subr.bf16.mxu0 %v933_v62 }
  0x71   :  { %872 = vmatpush3.bf16.msra.mxu1 %v931_v60 }
  0x72   :  { %873 = vmatprep.subr.bf16.mxu1 %v1038_v0  ;;  %821 = vmatpush3.bf16.msra.mxu0 %v935_v1  ;;  %v727_v0 = vld [vmem:[%s1188_s2] ss:$0 sm:$0xff] }
  0x73   :  { %822 = vmatprep.subr.bf16.mxu0 %v936_v2 }
  0x75   :  { %874 = vmatpush3.bf16.msra.mxu1 %v934_v63 }
  0x76   :  { %823 = vmatpush3.bf16.msra.mxu0 %v937_v3 }
 0x12b   :  { %v379_v4 = vpop.f32.mrb[0].mxu1  ;;  %v793_v8 = vpop.f32.mrb[0].mxu0 }
 0x12c   :  { %v857_v5 = vpop.f32.mrb[1].mxu1  ;;  %v794_v9 = vpop.f32.mrb[1].mxu0 }
 0x12d   :  { %v382_v6 = vpop.f32.mrb[2].mxu1  ;;  %v795_v10 = vadd.f32 %v794_v9, %v793_v8  ;;  %v796_v11 = vpop.f32.mrb[2].mxu0 }
 0x12e   :  { %v858_v7 = vpop.f32.mrb[3].mxu1  ;;  %v797_v12 = vpop.f32.mrb[3].mxu0 }
 0x12f   :  { %v339_v13 = vadd.f32 %v795_v10, %v727_v0  ;;  %v798_v14 = vadd.f32 %v797_v12, %v796_v11 }
 0x131   :  { %v380_v15 = vadd.f32 %v379_v4, %v339_v13  ;;  %v342_v16 = vadd.f32 %v798_v14, %v727_v0 }
 0x133   :  { %v383_v17 = vadd.f32 %v382_v6, %v342_v16  ;;  %v386_v18 = vmax.f32 %v380_v15, 0.0 }
 0x135   :  { %v387_v19 = vmax.f32 %v383_v17, 0.0 }
 0x137   :  { %v388_v20 = vpack.c.bf16 %v387_v19, %v386_v18 }
 0x139   :  { %v390_v21 = vshrl.u32 %v388_v20, 16  ;;  %v393_v25 = vshll.u32 %v388_v20, 16 }
 0x13b   :  { %v392_v23 = vrot.slane %v390_v21, 7 }
 0x13d   :  { %v395_v26 = vor.u32 %v393_v25, %v392_v23  ;;  %v399_v27 = vsel %vm1137_vm3, %v392_v23, 0 }
 0x13e   :  { %v416_v30 = vrot.slane %v399_v27, 1  ;;  %v408_v32 = vshll.u32 %v399_v27, 16 }
 0x13f   :  { %v398_v28 = vsel %vm1137_vm3, 0, %v395_v26 }
 0x140   :  { %v415_v29 = vrot.slane %v398_v28, 1  ;;  %v403_v31 = vshll.u32 %v398_v28, 16  ;;  %v401_v34 = vshrl.u32 %v398_v28, 16  ;;  %v410_v37 = vrot.slane %v408_v32, 1 }
 0x142   :  { %v417_v33 = vsel %vm100_vm5, %v415_v29, %v416_v30  ;;  %v405_v35 = vrot.slane %v403_v31, 1 }
 0x143   :  { %876 = vmatmul.mubr.bf16.vlgmr.msra.gmra.mrb[4].mxu1 %v417_v33 }
 0x144   :  { %v406_v36 = vor.u32 %v405_v35, %v401_v34 }
 0x146   :  { %v411_v38 = vsel %vm84_vm4, %v406_v36, %v410_v37 }
 0x147   :  { %650 = vmatprep.mubr.bf16.mxu0 %v411_v38 }
 0x148   :  { %651 = vmatmul.mubr.bf16.vlgmr.msra.gmra.mrb[4].mxu0 %v398_v28 }
 0x216   :  { %v693_v39 = vpop.f32.mrb[4].mxu1 }
 0x217   :  { %v877_v40 = vpop.f32.mrb[5].mxu1 }
 0x218   :  { %v696_v41 = vpop.f32.mrb[6].mxu1 }
 0x219   :  { %v878_v24 = vpop.f32.mrb[7].mxu1 }
 0x21b   :  { %v824_v42 = vpop.f32.mrb[4].mxu0 }
 0x21c   :  { %v825_v44 = vpop.f32.mrb[5].mxu0 }
 0x21d   :  { %v826_v45 = vadd.f32 %v825_v44, %v824_v42  ;;  %v827_v46 = vpop.f32.mrb[6].mxu0 }
 0x21e   :  { %v828_v47 = vpop.f32.mrb[7].mxu0 }
 0x21f   :  { %v653_v48 = vadd.f32 %v826_v45, %v752_v43  ;;  %v829_v50 = vadd.f32 %v828_v47, %v827_v46 }
 0x221   :  { %v694_v51 = vadd.f32 %v693_v39, %v653_v48  ;;  %v656_v52 = vadd.f32 %v829_v50, %v752_v43 }
 0x223   :  { %v702_v54 = vadd.f32 %v700_v49, %v694_v51  ;;  %v697_v55 = vadd.f32 %v696_v41, %v656_v52 }
 0x225   :  { %v704_v56 = vmax.f32 %v702_v54, 0.0  ;;  %v703_v57 = vadd.f32 %v701_v53, %v697_v55 }
 0x227   :  { %706 = vst [vmem:[#allocation8] sm:$0xff] %v704_v56  ;;  %v705_v58 = vmax.f32 %v703_v57, 0.0 }
 0x229   :  { %707 = vst [vmem:[#allocation8 + $0x8] sm:$0xff] %v705_v58 }
 0x22a   :  { %1016 = shalt.err (!%p1013_p0)
}
 0x22b   :  { %s1017_s10 = scalar_lea.hbm %s1191_s5, 256 }
 0x22c   :  { %p1018_p1 = scmp.ne.s32.totalorder %s1191_s5, %s1017_s10  ;;  %p1021_p2 = scmp.lt.u32.totalorder %s1017_s10, %s1191_s5 }
 0x22e   :  { %p1023_p3 = pnand %p1021_p2, %p1018_p1 }
 0x230   :  { %1026 = shalt.err (!%p1023_p3)
}
 0x231   :  { %s1041_s15 = smov 128   ;;  %s1042_s16 = smov 8  }
 0x232   :  { %719 = dma.vmem_to_hbm [thread:$0]  %s714_s7, 256, %s1191_s5, [#allocation4], %s1041_s15, %s1041_s15, %s1042_s16  }
 0x233   :  { %1031 = dma.done.wait [#allocation4], 256  }
 0x234   :  { %1032 = vsyncadd [#allocation4], 4294967040 }
 0x235   :  { %723 = vsyncpa [#allocation3], 1 }
 0x236   :  { %724 = vsyncpa [#allocation6], 1 }
 0x237   :  { %725 = vsyncpa [#allocation4], 1 }

</bundles_post_ra>
